<compile_context>
chip_gen: v6e
topology: v6e:2x2x1
jax: 0.10.0
libtpu: 0.0.40
codegen_flags: <defaults>
</compile_context>

<pallas_src>
import jax
import jax.numpy as jnp
from jax.experimental import pallas as pl
from jax.experimental.pallas import tpu as pltpu

W = 512                          # slab width in lanes (multiple of 128)
VMEM_BUDGET = 16 * 1024 * 1024   # cap on in-flight bytes: (in+out) x 2 buffers
VMEM_LIMIT = 32 * 1024 * 1024    # explicit scoped-VMEM limit (portable on v5e/v6e/v7x)
MIN_GRID_STEPS = 8               # keep v7x's 2 TCs fed + amortize pipeline startup
SMALL_BATCH_FASTPATH = 65536     # below this, fused XLA elementwise wins


def _round_up(a, m):
    return ((a + m - 1) // m) * m


def silu_linear_kernel(x_ref, w_ref, b_ref, o_ref):
    # Linear(1, 1): y = x * w + b, then y * sigmoid(y).
    # w/b live in SMEM (scalar path); x/o are lane-dense VMEM tiles.
    w = w_ref[0, 0].astype(jnp.float32)
    b = b_ref[0, 0].astype(jnp.float32)
    v1 = x_ref[...].astype(jnp.float32) * w + b        # VPU fma
    v2 = jax.nn.sigmoid(v1)                            # EUP transcendental
    o_ref[...] = (v1 * v2).astype(o_ref.dtype)


def model_forward(x, w, b, *, tm=2048, force_pallas=False):
    """x: (batch, 1) float array, w: (1, 1), b: (1,) or (1, 1)."""
    batch, in_f = x.shape
    assert in_f == 1 and w.shape == (1, 1), "Model is Linear(in=1, out=1)"
    dtype = x.dtype

    if batch == 0:  # degenerate case: nothing to do
        return jnp.zeros((0, 1), dtype=dtype)

    total = batch  # out_features == 1 -> one output element per input row

    # Small-batch fast path: launch + DMA setup would dominate a pallas_call.
    if total < SMALL_BATCH_FASTPATH and not force_pallas:
        v1 = x * w[0, 0] + jnp.reshape(b, (-1,))[0]
        return v1 * jax.nn.sigmoid(v1)

    w2 = jnp.asarray(w, dtype).reshape(1, 1)
    b2 = jnp.asarray(b, dtype).reshape(1, 1)

    itemsize = jnp.dtype(dtype).itemsize
    rows_needed = pl.cdiv(total, W)

    # ---- Row-tile selection (multiple of 8, VMEM-budgeted, enough grid steps) ----
    tm_cap_vmem = max(8, VMEM_BUDGET // (4 * W * itemsize))          # in+out, 2 bufs
    tm_cap_steps = max(8, _round_up(pl.cdiv(rows_needed, MIN_GRID_STEPS), 8))
    tm_eff = max(8, (min(tm, tm_cap_vmem, tm_cap_steps) // 8) * 8)
    tm_eff = min(tm_eff, _round_up(rows_needed, 8))

    rows_padded = _round_up(rows_needed, tm_eff)
    padded_len = rows_padded * W

    # ---- Lane-dense slab: pad only if a ragged tail exists (metadata reshape otherwise) ----
    flat = x.reshape(total)
    if padded_len != total:
        flat = jnp.pad(flat, (0, padded_len - total))
    slab = flat.reshape(rows_padded, W)

    grid = (rows_padded // tm_eff,)

    cost = pl.CostEstimate(
        flops=4 * padded_len,
        transcendentals=padded_len,
        bytes_accessed=2 * padded_len * itemsize,
    )

    out_slab = pl.pallas_call(
        silu_linear_kernel,
        out_shape=jax.ShapeDtypeStruct((rows_padded, W), dtype),
        grid=grid,
        in_specs=[
            pl.BlockSpec((tm_eff, W), lambda i: (i, 0)),          # x tile (VMEM)
            pl.BlockSpec(memory_space=pltpu.MemorySpace.SMEM),    # w scalar
            pl.BlockSpec(memory_space=pltpu.MemorySpace.SMEM),    # b scalar
        ],
        out_specs=pl.BlockSpec((tm_eff, W), lambda i: (i, 0)),
        compiler_params=pltpu.CompilerParams(
            dimension_semantics=("parallel",),
            vmem_limit_bytes=VMEM_LIMIT,
        ),
        cost_estimate=cost,
    )(slab, w2, b2)

    # Undo layout plumbing only if we actually padded.
    out_flat = out_slab.reshape(padded_len)
    if padded_len != total:
        out_flat = out_flat[:total]
    return out_flat.reshape(batch, 1)


def _reference(x, w, b):
    v1 = x @ w.T + b.reshape(1, -1)
    return v1 * jax.nn.sigmoid(v1)


if __name__ == "__main__":
    key = jax.random.PRNGKey(0)
    kx, kw, kb, kx2 = jax.random.split(key, 4)

    # Module implies Linear(in_features=1, out_features=1); input is (N, 1).
    batch = 8
    x = jax.random.normal(kx, (batch, 1), dtype=jnp.float32)

    # Deterministic parameter init (mimic PyTorch's U(-1/sqrt(fan_in), 1/sqrt(fan_in))).
    w = jax.random.uniform(kw, (1, 1), dtype=jnp.float32, minval=-1.0, maxval=1.0)
    b = jax.random.uniform(kb, (1,), dtype=jnp.float32, minval=-1.0, maxval=1.0)

    # Force the Pallas path at the toy size so the kernel is actually exercised.
    out = model_forward(x, w, b, force_pallas=True)
    jax.block_until_ready(out)
    ref = _reference(x, w, b)
    assert out.shape == ref.shape, (out.shape, ref.shape)
    assert jnp.allclose(out, ref, atol=1e-6), (out, ref)

    # A second, ragged size to exercise the padding / tail path.
    batch2 = 1000
    x2 = jax.random.normal(kx2, (batch2, 1), dtype=jnp.float32)
    out2 = model_forward(x2, w, b, force_pallas=True)
    jax.block_until_ready(out2)
    ref2 = _reference(x2, w, b)
    assert out2.shape == ref2.shape, (out2.shape, ref2.shape)
    assert jnp.allclose(out2, ref2, atol=1e-6)

    print("KERNEL_OK")
</pallas_src>

<mosaic_0001>
module attributes {stable_mosaic.version = 11 : i64} {
  func.func @silu_linear_kernel(%arg0: i32, %arg1: memref<8x512xf32, #tpu.memory_space<vmem>>, %arg2: memref<1x1xf32, #tpu.memory_space<smem>>, %arg3: memref<1x1xf32, #tpu.memory_space<smem>>, %arg4: memref<8x512xf32, #tpu.memory_space<vmem>>) attributes {dimension_semantics = [#tpu.dimension_semantics<parallel>], iteration_bounds = array<i64: 1>, scalar_prefetch = 0 : i64, scratch_operands = 0 : i64, tpu.core_type = #tpu.core_type<tc>, window_params = [{transform_indices = @transform_0, window_bounds = array<i64: 8, 512>}, {transform_indices = @transform_1, window_bounds = array<i64: 1, 1>}, {transform_indices = @transform_2, window_bounds = array<i64: 1, 1>}, {transform_indices = @transform_3, window_bounds = array<i64: 8, 512>}]} {
    %c0 = arith.constant 0 : index
    %c0_0 = arith.constant 0 : index
    %0 = memref.load %arg2[%c0, %c0_0] : memref<1x1xf32, #tpu.memory_space<smem>>
    %c0_1 = arith.constant 0 : index
    %c0_2 = arith.constant 0 : index
    %1 = memref.load %arg3[%c0_1, %c0_2] : memref<1x1xf32, #tpu.memory_space<smem>>
    %c0_3 = arith.constant 0 : index
    %c0_4 = arith.constant 0 : index
    %2 = vector.load %arg1[%c0_3, %c0_4] : memref<8x512xf32, #tpu.memory_space<vmem>>, vector<8x512xf32>
    %3 = vector.broadcast %0 : f32 to vector<8x512xf32>
    %4 = arith.mulf %2, %3 : vector<8x512xf32>
    %5 = vector.broadcast %1 : f32 to vector<8x512xf32>
    %6 = arith.addf %4, %5 : vector<8x512xf32>
    %7 = arith.negf %6 : vector<8x512xf32>
    %8 = math.exp %7 : vector<8x512xf32>
    %cst = arith.constant 1.000000e+00 : f32
    %9 = vector.broadcast %cst : f32 to vector<8x512xf32>
    %10 = arith.addf %9, %8 : vector<8x512xf32>
    %11 = arith.divf %9, %10 : vector<8x512xf32>
    %12 = arith.mulf %6, %11 : vector<8x512xf32>
    %c0_5 = arith.constant 0 : index
    %c0_6 = arith.constant 0 : index
    %13 = vector.load %arg4[%c0_5, %c0_6] : memref<8x512xf32, #tpu.memory_space<vmem>>, vector<8x512xf32>
    tpu.vector_store %arg4[%c0_5, %c0_6], %12 {strides = array<i32>} : memref<8x512xf32, #tpu.memory_space<vmem>>, vector<8x512xf32>,
    return
  }
  func.func @transform_0(%arg0: i32) -> (i32, i32) {
    %c0_i32 = arith.constant 0 : i32
    %c0_i32_0 = arith.constant 0 : i32
    return %arg0, %c0_i32 : i32, i32
  }
  func.func @transform_1(%arg0: i32) -> (i32, i32) {
    %c0_i32 = arith.constant 0 : i32
    %c0_i32_0 = arith.constant 0 : i32
    %c0_i32_1 = arith.constant 0 : i32
    return %c0_i32, %c0_i32_0 : i32, i32
  }
  func.func @transform_2(%arg0: i32) -> (i32, i32) {
    %c0_i32 = arith.constant 0 : i32
    %c0_i32_0 = arith.constant 0 : i32
    %c0_i32_1 = arith.constant 0 : i32
    return %c0_i32, %c0_i32_0 : i32, i32
  }
  func.func @transform_3(%arg0: i32) -> (i32, i32) {
    %c0_i32 = arith.constant 0 : i32
    %c0_i32_0 = arith.constant 0 : i32
    return %arg0, %c0_i32 : i32, i32
  }
}

</mosaic_0001>

<bundles_post_ra>
// kernel: tpu_custom_call.1
= control target key start
LH: loop header
LB: loop body
LE: loop exit
PB: predicated region body
PF: predicated region fallthrough
CT: control target
= control target key end

     0   :  { %10 = vsyncpa [#allocation5], 0  ;;  %s192_s0 = inlined_call_operand.hbm [shape: f32[8,512], index: 0, kind: input, shape index: {}]   ;;  %s193_s1 = inlined_call_operand.<no memory space> [shape: f32[1,1], index: 1, kind: input, shape index: {}]   ;;  %s194_s2 = inlined_call_operand.<no memory space> [shape: f32[1,1], index: 2, kind: input, shape index: {}]   ;;  %s195_s3 = inlined_call_operand.hbm [shape: f32[8,512], index: 3, kind: output, shape index: {}]  }
   0x1   :  { %11 = vsyncpa [#allocation6], 0  ;;  %s158_s12 = smov [#allocation4]  }
   0x2   :  { %s18_s13 = sshll.u32 %s158_s12, 4  ;;  %s19_s13 = int_to_ptr.vmem [resolvable:$true] %s18_s13 }
   0x3   :  { %s122_s14 = scalar_lea.vmem %s19_s13, 512  ;;  %p127_p1 = scmp.lt.s32.totalorder %s19_s13, %s19_s13 }
   0x4   :  { %p123_p0 = scmp.ne.s32.totalorder %s19_s13, %s122_s14  ;;  %p128_p2 = scmp.lt.s32.totalorder %s122_s14, %s122_s14 }
   0x6   :  { %p129_p3 = por %p128_p2, %p127_p1 }
   0x8   :  { %p130_p4 = pnand %p129_p3, %p123_p0 }
   0xa   :  { %133 = shalt.err (!%p130_p4)
}
   0xb   :  { %21 = dma.hbm_to_vmem [thread:$0]  %s192_s0, 512, %s19_s13, [#allocation5]  }
   0xc   :  { %154 = dma.done.wait [#allocation5], 512  }
   0xd   :  { %155 = vsyncadd [#allocation5], 4294966784  ;;  %v35_v0 = vstv %s193_s1  ;;  %v31_v1 = vld [vmem:[#allocation4] sm:$0xff]  ;;  %v40_v2 = vstv %s194_s2  ;;  %v32_v3 = vld [vmem:[#allocation4 + $0x8] sm:$0xff]  ;;  %s159_s0 = smov [#allocation7]  }
   0xe   :  { %v33_v4 = vld [vmem:[#allocation4 + $0x10] sm:$0xff]  ;;  %v36_v5 = vmul.f32 %v35_v0, %v31_v1  ;;  %v37_v6 = vmul.f32 %v35_v0, %v32_v3  ;;  %v34_v8 = vld [vmem:[#allocation4 + $0x18] sm:$0xff]  ;;  %s83_s1 = sshll.u32 %s159_s0, 4  ;;  %s84_s1 = int_to_ptr.vmem [resolvable:$true] %s83_s1 }
   0xf   :  { %v38_v7 = vmul.f32 %v35_v0, %v33_v4  ;;  %v39_v9 = vmul.f32 %v35_v0, %v34_v8  ;;  %s134_s2 = scalar_lea.vmem %s84_s1, 512  ;;  %p139_p6 = scmp.lt.s32.totalorder %s84_s1, %s84_s1 }
  0x10   :  { %v41_v10 = vadd.f32 %v40_v2, %v36_v5  ;;  %v42_v11 = vadd.f32 %v40_v2, %v37_v6  ;;  %p135_p5 = scmp.ne.s32.totalorder %s84_s1, %s134_s2  ;;  %p140_p7 = scmp.lt.s32.totalorder %s134_s2, %s134_s2 }
  0x11   :  { %v43_v12 = vadd.f32 %v40_v2, %v38_v7  ;;  %v44_v13 = vadd.f32 %v40_v2, %v39_v9 }
  0x12   :  { %v92_v14 = vmul.f32 -1.442695, %v41_v10  ;;  %v93_v15 = vmul.f32 -1.442695, %v42_v11  ;;  %p141_p8 = por %p140_p7, %p139_p6 }
  0x13   :  { %v94_v16 = vmul.f32 -1.442695, %v43_v12  ;;  %v95_v17 = vmul.f32 -1.442695, %v44_v13 }
  0x14   :  { %98 = vpow2.f32 %v92_v14  ;;  %p142_p9 = pnand %p141_p8, %p135_p5 }
  0x15   :  { %100 = vpow2.f32 %v93_v15 }
  0x16   :  { %102 = vpow2.f32 %v94_v16 }
  0x17   :  { %104 = vpow2.f32 %v95_v17 }
  0x21   :  { %v99_v18 = vpop.eup %98 }
  0x22   :  { %v101_v19 = vpop.eup %100  ;;  %v57_v20 = vadd.f32 1.0, %v99_v18 }
  0x23   :  { %v103_v21 = vpop.eup %102  ;;  %v58_v22 = vadd.f32 1.0, %v101_v19 }
  0x24   :  { %v105_v23 = vpop.eup %104  ;;  %106 = vrcp.f32 %v57_v20  ;;  %v59_v24 = vadd.f32 1.0, %v103_v21 }
  0x25   :  { %108 = vrcp.f32 %v58_v22  ;;  %v60_v25 = vadd.f32 1.0, %v105_v23 }
  0x26   :  { %110 = vrcp.f32 %v59_v24 }
  0x27   :  { %112 = vrcp.f32 %v60_v25 }
  0x31   :  { %v107_v26 = vpop.eup %106 }
  0x32   :  { %v109_v27 = vpop.eup %108  ;;  %v69_v28 = vmul.f32 %v107_v26, %v41_v10 }
  0x33   :  { %v111_v29 = vpop.eup %110  ;;  %v70_v30 = vmul.f32 %v109_v27, %v42_v11 }
  0x34   :  { %v113_v31 = vpop.eup %112  ;;  %73 = vst [vmem:[#allocation7] sm:$0xff] %v69_v28  ;;  %v71_v32 = vmul.f32 %v111_v29, %v43_v12 }
  0x35   :  { %74 = vst [vmem:[#allocation7 + $0x8] sm:$0xff] %v70_v30  ;;  %v72_v33 = vmul.f32 %v113_v31, %v44_v13 }
  0x36   :  { %75 = vst [vmem:[#allocation7 + $0x10] sm:$0xff] %v71_v32 }
  0x37   :  { %76 = vst [vmem:[#allocation7 + $0x18] sm:$0xff] %v72_v33 }
  0x38   :  { %145 = shalt.err (!%p142_p9)
}
  0x39   :  { %86 = dma.vmem_to_hbm [thread:$0]  %s84_s1, 512, %s195_s3, [#allocation6]  }
  0x3a   :  { %156 = dma.done.wait [#allocation6], 512  }
  0x3b   :  { %157 = vsyncadd [#allocation6], 4294966784 }
  0x3c   :  { %90 = vsyncpa [#allocation5], 1 }
  0x3d   :  { %91 = vsyncpa [#allocation6], 1 }

</bundles_post_ra>
